<compile_context>
chip_gen: v7x
topology: tpu7x:2x2x1
jax: 0.10.0
libtpu: 0.0.40
codegen_flags: <defaults>
</compile_context>

<pallas_src>
import jax
import jax.numpy as jnp
from jax.experimental import pallas as pl
from jax.experimental.pallas import tpu as pltpu

IN_FEATURES = 28 * 28   # 784
HIDDEN = 200
NUM_CLASSES = 10


def _mlp_kernel(x_ref, w1_ref, b1_ref, w2_ref, b2_ref, o_ref):
    # Cast the streamed f32 x tile to bf16 in VMEM (VPU op; keeps HBM traffic
    # at 4 B/elem single-pass instead of a separate wrapper cast pass).
    x = x_ref[...].astype(jnp.bfloat16)

    # fc1: (TB, 784)bf16 @ (784, 200)bf16 -> f32 accumulate, + bias, ReLU
    h = jnp.dot(x, w1_ref[...], preferred_element_type=jnp.float32)
    h = jnp.maximum(h + b1_ref[...], 0.0)

    # fc2: (TB, 200)bf16 @ (200, 10)bf16 -> f32 accumulate, + bias
    logits = jnp.dot(h.astype(jnp.bfloat16), w2_ref[...],
                     preferred_element_type=jnp.float32)
    logits = logits + b2_ref[...]

    # log_softmax over the class dim (numerically stable), in f32.
    m = jnp.max(logits, axis=-1, keepdims=True)
    shifted = logits - m
    lse = jnp.log(jnp.sum(jnp.exp(shifted), axis=-1, keepdims=True))
    o_ref[...] = (shifted - lse).astype(o_ref.dtype)


def _round_up(n, m):
    return ((n + m - 1) // m) * m


def simple_linear_forward(x, w1, b1, w2, b2):
    """x: (B, 1, 28, 28) or (B, 784) float32. Returns (B, 10) float32 log-probs.

    Weights are (in_features, out_features), so the kernel computes x @ W + b
    (equivalent to torch's x @ W.T with W stored (out, in)).
    """
    x2d = x.reshape(-1, IN_FEATURES).astype(jnp.float32)
    B = x2d.shape[0]
    H1 = w1.shape[1]
    C = w2.shape[1]

    # Batch tile: 512 rows at large B (good HBM streaming / pipelining),
    # rounded-up-to-8 at small B so tiny batches aren't padded to 512.
    TB = min(512, _round_up(B, 8))
    B_pad = _round_up(B, TB)
    grid = (B_pad // TB,)

    if B_pad != B:
        x2d = jnp.pad(x2d, ((0, B_pad - B), (0, 0)))

    # Weights are tiny (~0.3 MB total in bf16): cast once in the wrapper and
    # keep them resident in VMEM as bf16 MXU operands.
    w1_bf16 = w1.astype(jnp.bfloat16)
    w2_bf16 = w2.astype(jnp.bfloat16)
    b1_2d = b1.reshape(1, H1).astype(jnp.float32)
    b2_2d = b2.reshape(1, C).astype(jnp.float32)

    out = pl.pallas_call(
        _mlp_kernel,
        out_shape=jax.ShapeDtypeStruct((B_pad, C), jnp.float32),
        grid=grid,
        in_specs=[
            # x tiles stream / double-buffer along the batch grid axis.
            pl.BlockSpec((TB, IN_FEATURES), lambda i: (i, 0)),
            # Weights & biases: constant block index -> DMA'd once, resident.
            pl.BlockSpec((IN_FEATURES, H1), lambda i: (0, 0)),
            pl.BlockSpec((1, H1), lambda i: (0, 0)),
            pl.BlockSpec((H1, C), lambda i: (0, 0)),
            pl.BlockSpec((1, C), lambda i: (0, 0)),
        ],
        out_specs=pl.BlockSpec((TB, C), lambda i: (i, 0)),
        compiler_params=pltpu.CompilerParams(
            # Batch tiles are independent -> shard across TensorCores on v7x.
            dimension_semantics=("parallel",),
            # Working set: ~1.6 MB f32 x-tile x2 + ~0.33 MB weights x2
            # + ~0.5 MB f32 intermediates; leave headroom.
            vmem_limit_bytes=16 * 1024 * 1024,
        ),
    )(x2d, w1_bf16, b1_2d, w2_bf16, b2_2d)

    return out[:B]


def _init_params(key):
    """Deterministic init mirroring nn.Linear's U(-1/sqrt(fan_in), 1/sqrt(fan_in))."""
    k1, k2, k3, k4 = jax.random.split(key, 4)
    in1, h1, out = IN_FEATURES, HIDDEN, NUM_CLASSES
    bound1 = 1.0 / jnp.sqrt(in1)
    bound2 = 1.0 / jnp.sqrt(h1)
    # Stored as (in_features, out_features) so the kernel does x @ W.
    w1 = jax.random.uniform(k1, (in1, h1), jnp.float32, -bound1, bound1)
    b1 = jax.random.uniform(k2, (h1,), jnp.float32, -bound1, bound1)
    w2 = jax.random.uniform(k3, (h1, out), jnp.float32, -bound2, bound2)
    b2 = jax.random.uniform(k4, (out,), jnp.float32, -bound2, bound2)
    return w1, b1, w2, b2


def _reference_forward_bf16(x, w1, b1, w2, b2):
    """Pure-JAX reference matching the kernel's bf16-operand / f32-accum math."""
    x2d = x.reshape(-1, IN_FEATURES).astype(jnp.bfloat16)
    h = jnp.dot(x2d, w1.astype(jnp.bfloat16),
                preferred_element_type=jnp.float32) + b1
    h = jnp.maximum(h, 0.0)
    logits = jnp.dot(h.astype(jnp.bfloat16), w2.astype(jnp.bfloat16),
                     preferred_element_type=jnp.float32) + b2
    return jax.nn.log_softmax(logits, axis=1)


def _reference_forward_f32(x, w1, b1, w2, b2):
    """Full-precision reference mirroring the PyTorch module."""
    x2d = x.reshape(-1, IN_FEATURES)
    h = jnp.maximum(x2d @ w1 + b1, 0.0)
    logits = h @ w2 + b2
    return jax.nn.log_softmax(logits, axis=1)


if __name__ == "__main__":
    key = jax.random.PRNGKey(0)
    kx, kp = jax.random.split(key)

    # Small batch, NCHW input like an MNIST minibatch: (B, 1, 28, 28)
    B = 8
    x = jax.random.normal(kx, (B, 1, 28, 28), jnp.float32)
    w1, b1, w2, b2 = _init_params(kp)

    out = simple_linear_forward(x, w1, b1, w2, b2)
    out = jax.block_until_ready(out)
    assert out.shape == (B, NUM_CLASSES)

    # Tight check vs a reference using the same bf16-operand / f32-accum math.
    ref_bf16 = _reference_forward_bf16(x, w1, b1, w2, b2)
    assert jnp.allclose(out, ref_bf16, atol=2e-3, rtol=2e-3), \
        "mismatch vs bf16-matched reference"

    # Loose check vs the full-f32 PyTorch-equivalent math (bf16 operand rounding).
    ref_f32 = _reference_forward_f32(x, w1, b1, w2, b2)
    assert jnp.allclose(out, ref_f32, atol=5e-2, rtol=5e-2), \
        "mismatch vs f32 reference"

    print("KERNEL_OK")
</pallas_src>

<mosaic_0001>
module attributes {stable_mosaic.version = 11 : i64} {
  func.func @_mlp_kernel(%arg0: i32, %arg1: memref<8x784xf32, #tpu.memory_space<vmem>>, %arg2: memref<784x200xbf16, #tpu.memory_space<vmem>>, %arg3: memref<1x200xf32, #tpu.memory_space<vmem>>, %arg4: memref<200x10xbf16, #tpu.memory_space<vmem>>, %arg5: memref<1x10xf32, #tpu.memory_space<vmem>>, %arg6: memref<8x10xf32, #tpu.memory_space<vmem>>) attributes {dimension_semantics = [#tpu.dimension_semantics<parallel>], iteration_bounds = array<i64: 1>, scalar_prefetch = 0 : i64, scratch_operands = 0 : i64, tpu.core_type = #tpu.core_type<tc>, window_params = [{transform_indices = @transform_0, window_bounds = array<i64: 8, 784>}, {pipeline_mode = #tpu.pipeline_mode<synchronous>, transform_indices = @transform_1, window_bounds = array<i64: 784, 200>}, {pipeline_mode = #tpu.pipeline_mode<synchronous>, transform_indices = @transform_2, window_bounds = array<i64: 1, 200>}, {pipeline_mode = #tpu.pipeline_mode<synchronous>, transform_indices = @transform_3, window_bounds = array<i64: 200, 10>}, {pipeline_mode = #tpu.pipeline_mode<synchronous>, transform_indices = @transform_4, window_bounds = array<i64: 1, 10>}, {transform_indices = @transform_5, window_bounds = array<i64: 8, 10>}]} {
    %c0 = arith.constant 0 : index
    %c0_0 = arith.constant 0 : index
    %0 = vector.load %arg1[%c0, %c0_0] : memref<8x784xf32, #tpu.memory_space<vmem>>, vector<8x784xf32>
    %1 = arith.truncf %0 : vector<8x784xf32> to vector<8x784xbf16>
    %c0_1 = arith.constant 0 : index
    %c0_2 = arith.constant 0 : index
    %2 = vector.load %arg2[%c0_1, %c0_2] : memref<784x200xbf16, #tpu.memory_space<vmem>>, vector<784x200xbf16>
    %cst = arith.constant dense<0.000000e+00> : vector<8x200xf32>
    %3 = tpu.matmul %1, %2, %cst {dimension_numbers = #tpu.dot_dimension_numbers<[1], [0], [0], [1], [0, 0, 1, 1], [], []>} : vector<8x784xbf16>, vector<784x200xbf16>, vector<8x200xf32> -> vector<8x200xf32>
    %c0_3 = arith.constant 0 : index
    %c0_4 = arith.constant 0 : index
    %4 = vector.load %arg3[%c0_3, %c0_4] : memref<1x200xf32, #tpu.memory_space<vmem>>, vector<1x200xf32>
    %5 = vector.broadcast %4 : vector<1x200xf32> to vector<8x200xf32>
    %6 = arith.addf %3, %5 : vector<8x200xf32>
    %cst_5 = arith.constant 0.000000e+00 : f32
    %7 = vector.broadcast %cst_5 : f32 to vector<8x200xf32>
    %8 = arith.maximumf %6, %7 : vector<8x200xf32>
    %9 = arith.truncf %8 : vector<8x200xf32> to vector<8x200xbf16>
    %c0_6 = arith.constant 0 : index
    %c0_7 = arith.constant 0 : index
    %10 = vector.load %arg4[%c0_6, %c0_7] : memref<200x10xbf16, #tpu.memory_space<vmem>>, vector<200x10xbf16>
    %cst_8 = arith.constant dense<0.000000e+00> : vector<8x10xf32>
    %11 = tpu.matmul %9, %10, %cst_8 {dimension_numbers = #tpu.dot_dimension_numbers<[1], [0], [0], [1], [0, 0, 1, 1], [], []>} : vector<8x200xbf16>, vector<200x10xbf16>, vector<8x10xf32> -> vector<8x10xf32>
    %c0_9 = arith.constant 0 : index
    %c0_10 = arith.constant 0 : index
    %12 = vector.load %arg5[%c0_9, %c0_10] : memref<1x10xf32, #tpu.memory_space<vmem>>, vector<1x10xf32>
    %13 = vector.broadcast %12 : vector<1x10xf32> to vector<8x10xf32>
    %14 = arith.addf %11, %13 : vector<8x10xf32>
    %cst_11 = arith.constant dense<0xFF800000> : vector<8xf32>
    %15 = vector.multi_reduction <maximumf>, %14, %cst_11 [1] : vector<8x10xf32> to vector<8xf32>
    %16 = vector.shape_cast %15 : vector<8xf32> to vector<8x1xf32>
    %17 = vector.broadcast %16 : vector<8x1xf32> to vector<8x10xf32>
    %18 = arith.subf %14, %17 : vector<8x10xf32>
    %19 = math.exp %18 : vector<8x10xf32>
    %cst_12 = arith.constant dense<0.000000e+00> : vector<8xf32>
    %20 = vector.multi_reduction <add>, %19, %cst_12 [1] : vector<8x10xf32> to vector<8xf32>
    %21 = vector.shape_cast %20 : vector<8xf32> to vector<8x1xf32>
    %22 = math.log %21 : vector<8x1xf32>
    %23 = vector.broadcast %22 : vector<8x1xf32> to vector<8x10xf32>
    %24 = arith.subf %18, %23 : vector<8x10xf32>
    %c0_13 = arith.constant 0 : index
    %c0_14 = arith.constant 0 : index
    %25 = vector.load %arg6[%c0_13, %c0_14] : memref<8x10xf32, #tpu.memory_space<vmem>>, vector<8x10xf32>
    tpu.vector_store %arg6[%c0_13, %c0_14], %24 {strides = array<i32>} : memref<8x10xf32, #tpu.memory_space<vmem>>, vector<8x10xf32>,
    return
  }
  func.func @transform_0(%arg0: i32) -> (i32, i32) {
    %c0_i32 = arith.constant 0 : i32
    %c0_i32_0 = arith.constant 0 : i32
    return %arg0, %c0_i32 : i32, i32
  }
  func.func @transform_1(%arg0: i32) -> (i32, i32) {
    %c0_i32 = arith.constant 0 : i32
    %c0_i32_0 = arith.constant 0 : i32
    %c0_i32_1 = arith.constant 0 : i32
    return %c0_i32, %c0_i32_0 : i32, i32
  }
  func.func @transform_2(%arg0: i32) -> (i32, i32) {
    %c0_i32 = arith.constant 0 : i32
    %c0_i32_0 = arith.constant 0 : i32
    %c0_i32_1 = arith.constant 0 : i32
    return %c0_i32, %c0_i32_0 : i32, i32
  }
  func.func @transform_3(%arg0: i32) -> (i32, i32) {
    %c0_i32 = arith.constant 0 : i32
    %c0_i32_0 = arith.constant 0 : i32
    %c0_i32_1 = arith.constant 0 : i32
    return %c0_i32, %c0_i32_0 : i32, i32
  }
  func.func @transform_4(%arg0: i32) -> (i32, i32) {
    %c0_i32 = arith.constant 0 : i32
    %c0_i32_0 = arith.constant 0 : i32
    %c0_i32_1 = arith.constant 0 : i32
    return %c0_i32, %c0_i32_0 : i32, i32
  }
  func.func @transform_5(%arg0: i32) -> (i32, i32) {
    %c0_i32 = arith.constant 0 : i32
    %c0_i32_0 = arith.constant 0 : i32
    return %arg0, %c0_i32 : i32, i32
  }
}

</mosaic_0001>

<bundles_post_ra>
// kernel: tpu_custom_call.1
= control target key start
LH: loop header
LB: loop body
LE: loop exit
PB: predicated region body
PF: predicated region fallthrough
CT: control target
= control target key end

     0   :  { %s1726_s0 = inlined_call_operand.vmem [shape: f32[8,784], index: 0, kind: input, shape index: {}]   ;;  %s1727_s1 = inlined_call_operand.vmem [shape: bf16[784,200], index: 1, kind: input, shape index: {}]   ;;  %s1728_s2 = inlined_call_operand.vmem [shape: f32[1,200], index: 2, kind: input, shape index: {}]   ;;  %s1729_s3 = inlined_call_operand.vmem [shape: bf16[200,10], index: 3, kind: input, shape index: {}]   ;;  %s1730_s4 = inlined_call_operand.vmem [shape: f32[1,10], index: 4, kind: input, shape index: {}]   ;;  %s1731_s5 = inlined_call_operand.hbm [shape: f32[8,10], index: 5, kind: output, shape index: {}]  }
   0x1   :  { %v1117_v0 = vld [vmem:[%s1727_s1 + $0x104] ss:$8 sps:$4 sm:$0xff]   ;;  %v1119_v1 = vld [vmem:[%s1727_s1 + $0x100] ss:$8 sps:$4 sm:$0xff]   ;;  %v1120_v2 = vld [vmem:[%s1727_s1 + $0x114] ss:$8 sps:$4 sm:$0xff]  }
   0x2   :  { %681 = vmatprep.subr.bf16.mxu0 %v1117_v0  ;;  %v1122_v3 = vld [vmem:[%s1727_s1 + $0x110] ss:$8 sps:$4 sm:$0xff]   ;;  %v1123_v4 = vld [vmem:[%s1727_s1 + $0x124] ss:$8 sps:$4 sm:$0xff]   ;;  %v1125_v5 = vld [vmem:[%s1727_s1 + $0x120] ss:$8 sps:$4 sm:$0xff]  }
   0x3   :  { %682 = vmatpush1.bf16.msra.mxu0 %v1119_v1  ;;  %v1126_v6 = vld [vmem:[%s1727_s1 + $0x134] ss:$8 sps:$4 sm:$0xff]   ;;  %v1128_v7 = vld [vmem:[%s1727_s1 + $0x130] ss:$8 sps:$4 sm:$0xff]   ;;  %v1129_v8 = vld [vmem:[%s1727_s1 + $0x144] ss:$8 sps:$4 sm:$0xff]  }
   0x4   :  { %683 = vmatprep.subr.bf16.mxu0 %v1120_v2  ;;  %v1131_v9 = vld [vmem:[%s1727_s1 + $0x140] ss:$8 sps:$4 sm:$0xff]   ;;  %v1132_v10 = vld [vmem:[%s1727_s1 + $0x154] ss:$8 sps:$4 sm:$0xff]   ;;  %v1134_v11 = vld [vmem:[%s1727_s1 + $0x150] ss:$8 sps:$4 sm:$0xff]  }
   0x5   :  { %v1159_v12 = vld [vmem:[%s1727_s1 + $0x4] ss:$8 sps:$4 sm:$0xff]   ;;  %v1161_v13 = vld [vmem:[%s1727_s1] ss:$8 sps:$4 sm:$0xff]   ;;  %v1165_v15 = vld [vmem:[%s1727_s1 + $0x14] ss:$8 sps:$4 sm:$0xff]  }
   0x6   :  { %v1135_v14 = vld [vmem:[%s1727_s1 + $0x164] ss:$8 sps:$4 sm:$0xff]   ;;  %640 = vmatprep.subr.bf16.mxu1 %v1159_v12  ;;  %v1167_v16 = vld [vmem:[%s1727_s1 + $0x10] ss:$8 sps:$4 sm:$0xff]   ;;  %v1137_v17 = vld [vmem:[%s1727_s1 + $0x160] ss:$8 sps:$4 sm:$0xff]  }
   0x7   :  { %684 = vmatpush1.bf16.msra.mxu0 %v1122_v3  ;;  %641 = vmatpush1.bf16.msra.mxu1 %v1161_v13  ;;  %v1138_v18 = vld [vmem:[%s1727_s1 + $0x174] ss:$8 sps:$4 sm:$0xff]   ;;  %v1171_v19 = vld [vmem:[%s1727_s1 + $0x24] ss:$8 sps:$4 sm:$0xff]   ;;  %v1173_v21 = vld [vmem:[%s1727_s1 + $0x20] ss:$8 sps:$4 sm:$0xff]  }
   0x8   :  { %685 = vmatprep.subr.bf16.mxu0 %v1123_v4  ;;  %642 = vmatprep.subr.bf16.mxu1 %v1165_v15  ;;  %v25_v20 = vld [vmem:[%s1726_s0 + $0x18] sm:$0xff]  ;;  %v1141_v24 = vld [vmem:[%s1727_s1 + $0x184] ss:$8 sps:$4 sm:$0xff]   ;;  %v1143_v26 = vld [vmem:[%s1727_s1 + $0x180] ss:$8 sps:$4 sm:$0xff]  }
   0x9   :  { %v32_v22 = vpack.c.bf16 %v25_v20, %v25_v20  ;;  %v1140_v23 = vld [vmem:[%s1727_s1 + $0x170] ss:$8 sps:$4 sm:$0xff]   ;;  %v1177_v25 = vld [vmem:[%s1727_s1 + $0x34] ss:$8 sps:$4 sm:$0xff]   ;;  %v1183_v28 = vld [vmem:[%s1727_s1 + $0x44] ss:$8 sps:$4 sm:$0xff]  }
   0xa   :  { %v1179_v27 = vld [vmem:[%s1727_s1 + $0x30] ss:$8 sps:$4 sm:$0xff]   ;;  %v1144_v29 = vld [vmem:[%s1727_s1 + $0x194] ss:$8 sps:$4 sm:$0xff]   ;;  %v1185_v31 = vld [vmem:[%s1727_s1 + $0x40] ss:$8 sps:$4 sm:$0xff]  }
   0xb   :  { %686 = vmatpush1.bf16.msra.mxu0 %v1125_v5  ;;  %643 = vmatpush1.bf16.msra.mxu1 %v1167_v16  ;;  %v1146_v30 = vld [vmem:[%s1727_s1 + $0x190] ss:$8 sps:$4 sm:$0xff]   ;;  %v1189_v32 = vld [vmem:[%s1727_s1 + $0x54] ss:$8 sps:$4 sm:$0xff]   ;;  %v1147_v33 = vld [vmem:[%s1727_s1 + $0x1a4] ss:$8 sps:$4 sm:$0xff]  }
   0xc   :  { %687 = vmatprep.subr.bf16.mxu0 %v1126_v6  ;;  %644 = vmatprep.subr.bf16.mxu1 %v1171_v19  ;;  %v1149_v34 = vld [vmem:[%s1727_s1 + $0x1a0] ss:$8 sps:$4 sm:$0xff]   ;;  %v1191_v35 = vld [vmem:[%s1727_s1 + $0x50] ss:$8 sps:$4 sm:$0xff]   ;;  %v1195_v36 = vld [vmem:[%s1727_s1 + $0x64] ss:$8 sps:$4 sm:$0xff]  }
   0xd   :  { %713 = vmatprep.mubr.bf16.mxu0 %v32_v22  ;;  %v1150_v37 = vld [vmem:[%s1727_s1 + $0x1b4] ss:$8 sps:$4 sm:$0xff]   ;;  %v1152_v38 = vld [vmem:[%s1727_s1 + $0x1b0] ss:$8 sps:$4 sm:$0xff]   ;;  %v1197_v39 = vld [vmem:[%s1727_s1 + $0x60] ss:$8 sps:$4 sm:$0xff]  }
   0xe   :  { %v1201_v40 = vld [vmem:[%s1727_s1 + $0x74] ss:$8 sps:$4 sm:$0xff]   ;;  %v1153_v41 = vld [vmem:[%s1727_s1 + $0x1c4] ss:$8 sps:$4 sm:$0xff]   ;;  %v1155_v42 = vld [vmem:[%s1727_s1 + $0x1c0] ss:$8 sps:$4 sm:$0xff]  }
   0xf   :  { %688 = vmatpush1.bf16.msra.mxu0 %v1128_v7  ;;  %645 = vmatpush1.bf16.msra.mxu1 %v1173_v21  ;;  %v1203_v43 = vld [vmem:[%s1727_s1 + $0x70] ss:$8 sps:$4 sm:$0xff]   ;;  %v1207_v44 = vld [vmem:[%s1727_s1 + $0x84] ss:$8 sps:$4 sm:$0xff]   ;;  %v1156_v45 = vld [vmem:[%s1727_s1 + $0x1d4] ss:$8 sps:$4 sm:$0xff]  }
  0x10   :  { %689 = vmatprep.subr.bf16.mxu0 %v1129_v8  ;;  %646 = vmatprep.subr.bf16.mxu1 %v1177_v25  ;;  %v1158_v46 = vld [vmem:[%s1727_s1 + $0x1d0] ss:$8 sps:$4 sm:$0xff]   ;;  %v1209_v47 = vld [vmem:[%s1727_s1 + $0x80] ss:$8 sps:$4 sm:$0xff]   ;;  %v1213_v48 = vld [vmem:[%s1727_s1 + $0x94] ss:$8 sps:$4 sm:$0xff]  }
  0x11   :  { %v1162_v49 = vld [vmem:[%s1727_s1 + $0x1e4] ss:$8 sps:$4 sm:$0xff]   ;;  %v1164_v50 = vld [vmem:[%s1727_s1 + $0x1e0] ss:$8 sps:$4 sm:$0xff]   ;;  %v1215_v51 = vld [vmem:[%s1727_s1 + $0x90] ss:$8 sps:$4 sm:$0xff]  }
  0x12   :  { %v1219_v52 = vld [vmem:[%s1727_s1 + $0xa4] ss:$8 sps:$4 sm:$0xff]   ;;  %v1168_v53 = vld [vmem:[%s1727_s1 + $0x1f4] ss:$8 sps:$4 sm:$0xff]   ;;  %v1170_v54 = vld [vmem:[%s1727_s1 + $0x1f0] ss:$8 sps:$4 sm:$0xff]  }
  0x13   :  { %690 = vmatpush1.bf16.msra.mxu0 %v1131_v9  ;;  %647 = vmatpush1.bf16.msra.mxu1 %v1179_v27  ;;  %v24_v55 = vld [vmem:[%s1726_s0 + $0x10] sm:$0xff]  ;;  %v1221_v56 = vld [vmem:[%s1727_s1 + $0xa0] ss:$8 sps:$4 sm:$0xff]   ;;  %v1176_v58 = vld [vmem:[%s1727_s1 + $0x204] ss:$8 sps:$4 sm:$0xff]  }
  0x14   :  { %691 = vmatprep.subr.bf16.mxu0 %v1132_v10  ;;  %648 = vmatprep.subr.bf16.mxu1 %v1183_v28  ;;  %v1225_v57 = vld [vmem:[%s1727_s1 + $0xb4] ss:$8 sps:$4 sm:$0xff]   ;;  %v31_v59 = vpack.c.bf16 %v24_v55, %v24_v55  ;;  %v1227_v60 = vld [vmem:[%s1727_s1 + $0xb0] ss:$8 sps:$4 sm:$0xff]   ;;  %v23_v61 = vld [vmem:[%s1726_s0 + $0x8] sm:$0xff] }
  0x15   :  { %v1174_v62 = vld [vmem:[%s1727_s1 + $0x200] ss:$8 sps:$4 sm:$0xff]   ;;  %v1231_v63 = vld [vmem:[%s1727_s1 + $0xc4] ss:$8 sps:$4 sm:$0xff]   ;;  %v30_v0 = vpack.c.bf16 %v23_v61, %v23_v61  ;;  %v1182_v1 = vld [vmem:[%s1727_s1 + $0x214] ss:$8 sps:$4 sm:$0xff]  }
  0x16   :  { %v1233_v2 = vld [vmem:[%s1727_s1 + $0xc0] ss:$8 sps:$4 sm:$0xff]   ;;  %v1180_v4 = vld [vmem:[%s1727_s1 + $0x210] ss:$8 sps:$4 sm:$0xff]   ;;  %v1237_v5 = vld [vmem:[%s1727_s1 + $0xd4] ss:$8 sps:$4 sm:$0xff]  }
  0x17   :  { %692 = vmatpush1.bf16.msra.mxu0 %v1134_v11  ;;  %649 = vmatpush1.bf16.msra.mxu1 %v1185_v31  ;;  %v27_v3 = vld [vmem:[%s1726_s0 + $0x28] sm:$0xff]  ;;  %v1239_v9 = vld [vmem:[%s1727_s1 + $0xd0] ss:$8 sps:$4 sm:$0xff]   ;;  %v1194_v11 = vld [vmem:[%s1727_s1 + $0x234] ss:$8 sps:$4 sm:$0xff]  }
  0x18   :  { %693 = vmatprep.subr.bf16.mxu0 %v1135_v14  ;;  %650 = vmatprep.subr.bf16.mxu1 %v1189_v32  ;;  %v34_v6 = vpack.c.bf16 %v27_v3, %v27_v3  ;;  %v1188_v7 = vld [vmem:[%s1727_s1 + $0x224] ss:$8 sps:$4 sm:$0xff]   ;;  %v1186_v8 = vld [vmem:[%s1727_s1 + $0x220] ss:$8 sps:$4 sm:$0xff]   ;;  %v1192_v12 = vld [vmem:[%s1727_s1 + $0x230] ss:$8 sps:$4 sm:$0xff]  }
  0x19   :  { %672 = vmatprep.mubr.bf16.mxu1 %v30_v0  ;;  %v1243_v10 = vld [vmem:[%s1727_s1 + $0xe4] ss:$8 sps:$4 sm:$0xff]   ;;  %v1245_v13 = vld [vmem:[%s1727_s1 + $0xe0] ss:$8 sps:$4 sm:$0xff]   ;;  %v1249_v15 = vld [vmem:[%s1727_s1 + $0xf4] ss:$8 sps:$4 sm:$0xff]  }
  0x1a   :  { %v1200_v14 = vld [vmem:[%s1727_s1 + $0x244] ss:$8 sps:$4 sm:$0xff]   ;;  %v1251_v16 = vld [vmem:[%s1727_s1 + $0xf0] ss:$8 sps:$4 sm:$0xff]  }
  0x1b   :  { %694 = vmatpush1.bf16.msra.mxu0 %v1137_v17  ;;  %651 = vmatpush1.bf16.msra.mxu1 %v1191_v35  ;;  %v22_v17 = vld [vmem:[%s1726_s0] sm:$0xff] }
  0x1c   :  { %695 = vmatprep.subr.bf16.mxu0 %v1138_v18  ;;  %652 = vmatprep.subr.bf16.mxu1 %v1195_v36  ;;  %v1198_v18 = vld [vmem:[%s1727_s1 + $0x240] ss:$8 sps:$4 sm:$0xff]   ;;  %v1260_v19 = vld [vmem:[%s1727_s1 + $0x304] ss:$8 sps:$4 sm:$0xff]  }
  0x1f   :  { %696 = vmatpush1.bf16.msra.mxu0 %v1140_v23  ;;  %653 = vmatpush1.bf16.msra.mxu1 %v1197_v39 }
  0x20   :  { %697 = vmatprep.subr.bf16.mxu0 %v1141_v24  ;;  %654 = vmatprep.subr.bf16.mxu1 %v1201_v40 }
  0x23   :  { %698 = vmatpush1.bf16.msra.mxu0 %v1143_v26  ;;  %655 = vmatpush1.bf16.msra.mxu1 %v1203_v43 }
  0x24   :  { %699 = vmatprep.subr.bf16.mxu0 %v1144_v29  ;;  %656 = vmatprep.subr.bf16.mxu1 %v1207_v44 }
  0x27   :  { %700 = vmatpush1.bf16.msra.mxu0 %v1146_v30  ;;  %657 = vmatpush1.bf16.msra.mxu1 %v1209_v47 }
  0x28   :  { %701 = vmatprep.subr.bf16.mxu0 %v1147_v33  ;;  %658 = vmatprep.subr.bf16.mxu1 %v1213_v48 }
  0x2b   :  { %702 = vmatpush1.bf16.msra.mxu0 %v1149_v34  ;;  %659 = vmatpush1.bf16.msra.mxu1 %v1215_v51 }
  0x2c   :  { %703 = vmatprep.subr.bf16.mxu0 %v1150_v37  ;;  %660 = vmatprep.subr.bf16.mxu1 %v1219_v52 }
  0x2f   :  { %704 = vmatpush1.bf16.msra.mxu0 %v1152_v38  ;;  %661 = vmatpush1.bf16.msra.mxu1 %v1221_v56 }
  0x30   :  { %705 = vmatprep.subr.bf16.mxu0 %v1153_v41  ;;  %662 = vmatprep.subr.bf16.mxu1 %v1225_v57 }
  0x33   :  { %706 = vmatpush1.bf16.msra.mxu0 %v1155_v42  ;;  %663 = vmatpush1.bf16.msra.mxu1 %v1227_v60 }
  0x34   :  { %707 = vmatprep.subr.bf16.mxu0 %v1156_v45  ;;  %664 = vmatprep.subr.bf16.mxu1 %v1231_v63 }
  0x37   :  { %708 = vmatpush1.bf16.msra.mxu0 %v1158_v46  ;;  %665 = vmatpush1.bf16.msra.mxu1 %v1233_v2 }
  0x38   :  { %709 = vmatprep.subr.bf16.mxu0 %v1162_v49  ;;  %666 = vmatprep.subr.bf16.mxu1 %v1237_v5 }
  0x3b   :  { %710 = vmatpush1.bf16.msra.mxu0 %v1164_v50  ;;  %667 = vmatpush1.bf16.msra.mxu1 %v1239_v9 }
  0x3c   :  { %711 = vmatprep.subr.bf16.mxu0 %v1168_v53  ;;  %668 = vmatprep.subr.bf16.mxu1 %v1243_v10 }
  0x3f   :  { %712 = vmatpush1.bf16.msra.mxu0 %v1170_v54  ;;  %669 = vmatpush1.bf16.msra.mxu1 %v1245_v13 }
  0x40   :  { %722 = vmatprep.subr.bf16.mxu0 %v1176_v58  ;;  %670 = vmatprep.subr.bf16.mxu1 %v1249_v15 }
  0x42   :  { %714 = vmatmul.mubr.bf16.vlgmr.msra.gmra.mrb[0].mxu0 %v31_v59 }
  0x43   :  { %723 = vmatpush1.bf16.msra.mxu0 %v1174_v62  ;;  %754 = vmatprep.mubr.bf16.mxu0 %v34_v6 }
  0x44   :  { %724 = vmatprep.subr.bf16.mxu0 %v1182_v1 }
  0x47   :  { %725 = vmatpush1.bf16.msra.mxu0 %v1180_v4 }
  0x48   :  { %726 = vmatprep.subr.bf16.mxu0 %v1188_v7 }
  0x4b   :  { %727 = vmatpush1.bf16.msra.mxu0 %v1186_v8 }
  0x4c   :  { %728 = vmatprep.subr.bf16.mxu0 %v1194_v11 }
  0x4f   :  { %729 = vmatpush1.bf16.msra.mxu0 %v1192_v12 }
  0x50   :  { %10 = vsyncpa [#allocation3], 0  ;;  %730 = vmatprep.subr.bf16.mxu0 %v1200_v14  ;;  %v1206_v20 = vld [vmem:[%s1727_s1 + $0x254] ss:$8 sps:$4 sm:$0xff]   ;;  %v29_v21 = vpack.c.bf16 %v22_v17, %v22_v17  ;;  %671 = vmatpush1.bf16.msra.mxu1 %v1251_v16  ;;  %v1258_v22 = vld [vmem:[%s1727_s1 + $0x300] ss:$8 sps:$4 sm:$0xff]   ;;  %v136_v7 = vlaneseq }
  0x51   :  { %v1204_v23 = vld [vmem:[%s1727_s1 + $0x250] ss:$8 sps:$4 sm:$0xff]   ;;  %763 = vmatprep.subr.bf16.mxu1 %v1260_v19  ;;  %v1212_v24 = vld [vmem:[%s1727_s1 + $0x264] ss:$8 sps:$4 sm:$0xff]   ;;  %v1305_v25 = vmov 0   ;;  %vm636_vm0 = vcmask 130048  }
  0x52   :  { %v28_v26 = vld [vmem:[%s1726_s0 + $0x30] sm:$0xff]  ;;  %v1210_v27 = vld [vmem:[%s1727_s1 + $0x260] ss:$8 sps:$4 sm:$0xff]   ;;  %v1224_v32 = vld [vmem:[%s1727_s1 + $0x284] ss:$8 sps:$4 sm:$0xff]   ;;  %vm919_vm1 = vcmask 1043456  }
  0x53   :  { %731 = vmatpush1.bf16.msra.mxu0 %v1198_v18  ;;  %673 = vmatmul.mubr.bf16.vlgmr.msra.gmra.mrb[0].mxu1 %v29_v21  ;;  %v1218_v28 = vld [vmem:[%s1727_s1 + $0x274] ss:$8 sps:$4 sm:$0xff]   ;;  %v35_v29 = vpack.c.bf16 %v28_v26, %v28_v26  ;;  %v1264_v30 = vld [vmem:[%s1729_s3] sm:$0xff]   ;;  %v1216_v31 = vld [vmem:[%s1727_s1 + $0x270] ss:$8 sps:$4 sm:$0xff]   ;;  %v137_v8 = vshrl.u32 %v136_v7, 7 }
  0x54   :  { %732 = vmatprep.subr.bf16.mxu0 %v1206_v20  ;;  %764 = vmatpush1.bf16.msra.mxu1 %v1258_v22  ;;  %v1265_v33 = vld [vmem:[%s1729_s3 + $0x8] sm:$0xff]   ;;  %v1230_v35 = vld [vmem:[%s1727_s1 + $0x294] ss:$8 sps:$4 sm:$0xff]   ;;  %v1228_v37 = vld [vmem:[%s1727_s1 + $0x290] ss:$8 sps:$4 sm:$0xff]   ;;  %vm915_vm2 = vcmask 588800  }
  0x55   :  { %795 = vmatprep.mubr.bf16.mxu1 %v1305_v25  ;;  %923 = vmatprep.subr.bf16.mxu1 %v1305_v25  ;;  %v1222_v34 = vld [vmem:[%s1727_s1 + $0x280] ss:$8 sps:$4 sm:$0xff]   ;;  %v1266_v36 = vld [vmem:[%s1729_s3 + $0x10] sm:$0xff]   ;;  %v1236_v38 = vld [vmem:[%s1727_s1 + $0x2a4] ss:$8 sps:$4 sm:$0xff]   ;;  %v138_v9 = vsub.s32 0, %v137_v8 }
  0x56   :  { %v1267_v39 = vld [vmem:[%s1729_s3 + $0x18] sm:$0xff]   ;;  %v1234_v40 = vld [vmem:[%s1727_s1 + $0x2a0] ss:$8 sps:$4 sm:$0xff]   ;;  %v1248_v44 = vld [vmem:[%s1727_s1 + $0x2c4] ss:$8 sps:$4 sm:$0xff]   ;;  %v142_v11 = vsub.s32 1, %v137_v8 }
  0x57   :  { %733 = vmatpush1.bf16.msra.mxu0 %v1204_v23  ;;  %v1242_v41 = vld [vmem:[%s1727_s1 + $0x2b4] ss:$8 sps:$4 sm:$0xff]   ;;  %v1268_v42 = vld [vmem:[%s1729_s3 + $0x20] sm:$0xff]   ;;  %v1240_v43 = vld [vmem:[%s1727_s1 + $0x2b0] ss:$8 sps:$4 sm:$0xff]   ;;  %vm963_vm3 = vcmask 80896  }
  0x58   :  { %734 = vmatprep.subr.bf16.mxu0 %v1212_v24  ;;  %v1269_v45 = vld [vmem:[%s1729_s3 + $0x28] sm:$0xff]   ;;  %v1254_v47 = vld [vmem:[%s1727_s1 + $0x2d4] ss:$8 sps:$4 sm:$0xff]   ;;  %v1252_v49 = vld [vmem:[%s1727_s1 + $0x2d0] ss:$8 sps:$4 sm:$0xff]  }
  0x59   :  { %v1246_v46 = vld [vmem:[%s1727_s1 + $0x2c0] ss:$8 sps:$4 sm:$0xff]   ;;  %v1270_v48 = vld [vmem:[%s1729_s3 + $0x30] sm:$0xff]   ;;  %v1257_v50 = vld [vmem:[%s1727_s1 + $0x2e4] ss:$8 sps:$4 sm:$0xff]  }
  0x5a   :  { %v1271_v51 = vld [vmem:[%s1729_s3 + $0x38] sm:$0xff]   ;;  %v1255_v52 = vld [vmem:[%s1727_s1 + $0x2e0] ss:$8 sps:$4 sm:$0xff]   ;;  %v1274_v59 = vld [vmem:[%s1729_s3 + $0x50] sm:$0xff]  }
  0x5b   :  { %735 = vmatpush1.bf16.msra.mxu0 %v1210_v27  ;;  %1089 = vmatmul.mubr.msk.bf16.vlgmr.msra.gmra.mrb[4].mxu1 %vm636_vm0, %v35_v29  ;;  %v1263_v53 = vld [vmem:[%s1727_s1 + $0x2f4] ss:$8 sps:$4 sm:$0xff]   ;;  %v1261_v54 = vld [vmem:[%s1727_s1 + $0x2f0] ss:$8 sps:$4 sm:$0xff]   ;;  %v26_v55 = vld [vmem:[%s1726_s0 + $0x20] sm:$0xff] }
  0x5c   :  { %736 = vmatprep.subr.bf16.mxu0 %v1218_v28  ;;  %924 = vmatpush1.bf16.msra.mxu1 %v1264_v30  ;;  %v33_v56 = vpack.c.bf16 %v26_v55, %v26_v55  ;;  %v1272_v57 = vld [vmem:[%s1729_s3 + $0x40] sm:$0xff]   ;;  %v1273_v58 = vld [vmem:[%s1729_s3 + $0x48] sm:$0xff]   ;;  %v1275_v60 = vld [vmem:[%s1729_s3 + $0x58] sm:$0xff]  }
  0x5d   :  { %925 = vmatprep.subr.bf16.mxu1 %v1305_v25  ;;  %v1276_v61 = vld [vmem:[%s1729_s3 + $0x60] ss:$0 sps:$4 sm:$0xff]  }
  0x5e   :  { %v921_v62 = vsel %vm919_vm1, %v1276_v61, 0  ;;  %v134_v10 = vld [vmem:[%s1728_s2] sm:$0x3] }
  0x5f   :  { %737 = vmatpush1.bf16.msra.mxu0 %v1216_v31  ;;  %v139_v12 = vrot.slane %v134_v10, %v138_v9  ;;  %v143_v13 = vrot.slane %v134_v10, %v142_v11  ;;  %v1090_v28 = vld [vmem:[%s1730_s4] ss:$0 sm:$0xff]  ;;  %s1306_s4 = smov [#allocation2]  }
  0x60   :  { %738 = vmatprep.subr.bf16.mxu0 %v1224_v32  ;;  %926 = vmatpush1.bf16.msra.mxu1 %v1265_v33  ;;  %s983_s29 = sshll.u32 %s1306_s4, 4  ;;  %s984_s29 = int_to_ptr.vmem [resolvable:$true] %s983_s29 }
  0x61   :  { %927 = vmatprep.subr.bf16.mxu1 %v1305_v25  ;;  %s1281_s30 = scalar_lea.vmem %s984_s29, 128  ;;  %p1286_p1 = scmp.lt.s32.totalorder %s984_s29, %s984_s29 }
  0x62   :  { %p1282_p0 = scmp.ne.s32.totalorder %s984_s29, %s1281_s30  ;;  %p1287_p2 = scmp.lt.s32.totalorder %s1281_s30, %s1281_s30 }
  0x63   :  { %739 = vmatpush1.bf16.msra.mxu0 %v1222_v34 }
  0x64   :  { %740 = vmatprep.subr.bf16.mxu0 %v1230_v35  ;;  %928 = vmatpush1.bf16.msra.mxu1 %v1266_v36  ;;  %p1288_p3 = por %p1287_p2, %p1286_p1 }
  0x65   :  { %929 = vmatprep.subr.bf16.mxu1 %v1305_v25 }
  0x66   :  { %p1289_p4 = pnand %p1288_p3, %p1282_p0 }
  0x67   :  { %741 = vmatpush1.bf16.msra.mxu0 %v1228_v37 }
  0x68   :  { %742 = vmatprep.subr.bf16.mxu0 %v1236_v38  ;;  %930 = vmatpush1.bf16.msra.mxu1 %v1267_v39 }
  0x69   :  { %931 = vmatprep.subr.bf16.mxu1 %v1305_v25 }
  0x6b   :  { %743 = vmatpush1.bf16.msra.mxu0 %v1234_v40 }
  0x6c   :  { %744 = vmatprep.subr.bf16.mxu0 %v1242_v41  ;;  %932 = vmatpush1.bf16.msra.mxu1 %v1268_v42 }
  0x6d   :  { %933 = vmatprep.subr.bf16.mxu1 %v1305_v25 }
  0x6f   :  { %745 = vmatpush1.bf16.msra.mxu0 %v1240_v43 }
  0x70   :  { %746 = vmatprep.subr.bf16.mxu0 %v1248_v44  ;;  %934 = vmatpush1.bf16.msra.mxu1 %v1269_v45 }
  0x71   :  { %935 = vmatprep.subr.bf16.mxu1 %v1305_v25 }
  0x73   :  { %747 = vmatpush1.bf16.msra.mxu0 %v1246_v46 }
  0x74   :  { %748 = vmatprep.subr.bf16.mxu0 %v1254_v47  ;;  %936 = vmatpush1.bf16.msra.mxu1 %v1270_v48 }
  0x75   :  { %937 = vmatprep.subr.bf16.mxu1 %v1305_v25 }
  0x77   :  { %749 = vmatpush1.bf16.msra.mxu0 %v1252_v49 }
  0x78   :  { %750 = vmatprep.subr.bf16.mxu0 %v1257_v50  ;;  %938 = vmatpush1.bf16.msra.mxu1 %v1271_v51 }
  0x79   :  { %939 = vmatprep.subr.bf16.mxu1 %v1305_v25 }
  0x7b   :  { %751 = vmatpush1.bf16.msra.mxu0 %v1255_v52 }
  0x7c   :  { %752 = vmatprep.subr.bf16.mxu0 %v1263_v53  ;;  %940 = vmatpush1.bf16.msra.mxu1 %v1272_v57 }
  0x7d   :  { %941 = vmatprep.subr.bf16.mxu1 %v1305_v25 }
  0x7f   :  { %753 = vmatpush1.bf16.msra.mxu0 %v1261_v54 }
  0x80   :  { %942 = vmatpush1.bf16.msra.mxu1 %v1273_v58 }
  0x81   :  { %943 = vmatprep.subr.bf16.mxu1 %v1305_v25 }
  0x82   :  { %755 = vmatmul.mubr.bf16.vlgmr.msra.gmra.mrb[0].mxu0 %v33_v56 }
  0x84   :  { %944 = vmatpush1.bf16.msra.mxu1 %v1274_v59 }
  0x85   :  { %945 = vmatprep.subr.bf16.mxu1 %v1305_v25 }
  0x88   :  { %946 = vmatpush1.bf16.msra.mxu1 %v1275_v60 }
  0x89   :  { %947 = vmatprep.subr.bf16.mxu1 %v1305_v25 }
  0x8c   :  { %948 = vmatpush1.bf16.msra.mxu1 %v921_v62 }
 0x126   :  { %v674_v63 = vpop.f32.mrb[0].mxu1 }
 0x127   :  { %v676_v0 = vpop.f32.mrb[1].mxu1  ;;  %v675_v14 = vadd.f32 %v674_v63, %v139_v12 }
 0x128   :  { %v678_v1 = vpop.f32.mrb[2].mxu1  ;;  %v677_v15 = vadd.f32 %v676_v0, %v143_v13 }
 0x129   :  { %v679_v2 = vpop.f32.mrb[3].mxu1 }
 0x12e   :  { %v797_v3 = vpop.f32.mrb[4].mxu1 }
 0x12f   :  { %v799_v4 = vpop.f32.mrb[5].mxu1 }
 0x130   :  { %v801_v5 = vpop.f32.mrb[6].mxu1 }
 0x131   :  { %v802_v6 = vpop.f32.mrb[7].mxu1 }
 0x155   :  { %v756_v16 = vpop.f32.mrb[0].mxu0 }
 0x156   :  { %v1106_v17 = vadd.f32 %v756_v16, %v675_v14  ;;  %v758_v18 = vpop.f32.mrb[1].mxu0 }
 0x157   :  { %v1109_v19 = vadd.f32 %v758_v18, %v677_v15  ;;  %v760_v20 = vpop.f32.mrb[2].mxu0 }
 0x158   :  { %v1107_v21 = vadd.f32 %v1106_v17, %v797_v3  ;;  %v761_v22 = vpop.f32.mrb[3].mxu0 }
 0x159   :  { %v1110_v23 = vadd.f32 %v1109_v19, %v799_v4 }
 0x15a   :  { %v804_v24 = vmax.f32 %v1107_v21, 0.0 }
 0x15b   :  { %v805_v25 = vmax.f32 %v1110_v23, 0.0 }
 0x15c   :  { %v806_v27 = vpack.c.bf16 %v804_v24, %v804_v24 }
 0x15d   :  { %v807_v26 = vpack.c.bf16 %v805_v25, %v805_v25 }
 0x15f   :  { %1104 = vmatprep.mubr.msk.bf16.mxu1 %vm915_vm2, %v807_v26 }
 0x160   :  { %956 = vmatmul.mubr.bf16.vlgmr.msra.gmra.mrb[8].mxu1 %v806_v27 }
 0x233   :  { %v957_v29 = vpop.f32.mrb[8].mxu1 }
 0x234   :  { %v958_v30 = vadd.f32 %v1090_v28, %v957_v29  ;;  %v959_v31 = vpop.f32.mrb[9].mxu1 }
 0x235   :  { %v960_v32 = vpop.f32.mrb[10].mxu1 }
 0x236   :  { %v961_v33 = vpop.f32.mrb[11].mxu1  ;;  %v964_v34 = vsel %vm963_vm3, %v958_v30, -inf }
 0x237   :  { %965 = vmax.xlane.f32.xlu0 %v964_v34 }
 0x2c4   :  { %v966_v35 = vpop.xlane.xlu0 %965 }
 0x2c5   :  { %v967_v36 = vsub.f32 %v958_v30, %v966_v35 }
 0x2c7   :  { %v968_v37 = vmul.f32 1.442695, %v967_v36 }
 0x2c9   :  { %1277 = vpow2.f32 %v968_v37 }
 0x2d3   :  { %v1278_v38 = vpop.eup %1277 }
 0x2d4   :  { %v970_v39 = vsel %vm963_vm3, %v1278_v38, 0.0 }
 0x2d5   :  { %971 = vadd.xlane.f32.xlu0 %v970_v39 }
 0x362   :  { %v972_v40 = vpop.xlane.xlu0 %971 }
 0x363   :  { %1279 = vlog2.f32 %v972_v40 }
 0x36d   :  { %v1280_v41 = vpop.eup %1279 }
 0x36e   :  { %v974_v42 = vmul.f32 0.6931472, %v1280_v41 }
 0x370   :  { %v975_v43 = vsub.f32 %v967_v36, %v974_v42 }
 0x372   :  { %976 = vst.msk [vmem:[#allocation2] sm:$0xff] %vm963_vm3, %v975_v43 }
 0x373   :  { %1292 = shalt.err (!%p1289_p4)
}
 0x374   :  { %s1293_s8 = scalar_lea.hbm %s1731_s5, 128 }
 0x375   :  { %p1294_p5 = scmp.ne.s32.totalorder %s1731_s5, %s1293_s8  ;;  %p1297_p6 = scmp.lt.u32.totalorder %s1293_s8, %s1731_s5 }
 0x377   :  { %p1299_p7 = pnand %p1297_p6, %p1294_p5 }
 0x379   :  { %1302 = shalt.err (!%p1299_p7)
}
 0x37a   :  { %986 = dma.vmem_to_hbm [thread:$0]  %s984_s29, 128, %s1731_s5, [#allocation3]  }
 0x37b   :  { %1303 = dma.done.wait [#allocation3], 128  }
 0x37c   :  { %1304 = vsyncadd [#allocation3], 4294967168 }
 0x37d   :  { %990 = vsyncpa [#allocation3], 1 }

</bundles_post_ra>
